<compile_context>
chip_gen: v5e
topology: v5e:2x2
jax: 0.10.0
libtpu: 0.0.40
codegen_flags: <defaults>
</compile_context>

<pallas_src>
import functools
import math

import jax
import jax.numpy as jnp
from jax.experimental import pallas as pl
from jax.experimental.pallas import tpu as pltpu


# --------------------------------------------------------------------------
# Pallas kernel: one batch row of _knowledge_gat
# --------------------------------------------------------------------------
def _gat_kernel(nh_ref, nr_ref, nt_ref, t_ref, w_ref, wa_ref, o_ref, *, ng):
    """Block shapes seen by the kernel:
      nh_ref/nr_ref/nt_ref : (1, T, N, D)
      t_ref                : (1, T, D)
      w_ref                : (D, D)     W_GAT
      wa_ref               : (3, D)     rows = W_GAT @ a_h, W_GAT @ a_r, W_GAT @ a_t
      o_ref                : (1, 1, D)  per-batch-row output (sum over T)
    """
    nh = nh_ref[0]                  # (T, N, D)
    nr = nr_ref[0]
    nt = nt_ref[0]
    t_rows = t_ref[0]               # (T, D)
    w = w_ref[...]                  # (D, D)
    wa_h = wa_ref[0:1, :]           # (1, D)
    wa_r = wa_ref[1:2, :]
    wa_t = wa_ref[2:3, :]

    # Attention logits via matvecs against the precomputed W @ a_{h,r,t}
    # (algebraically identical to concat([nh@W, nr@W, nt@W]) @ a_GAT).
    pi = (jnp.sum(nh * wa_h, axis=-1)
          + jnp.sum(nr * wa_r, axis=-1)
          + jnp.sum(nt * wa_t, axis=-1))              # (T, N), N on lane axis
    pi = jnp.where(pi >= 0.0, pi, ng * pi)            # LeakyReLU(ng)

    # Softmax over the neighbor axis N (lane axis of the (T, N) tile).
    pi = pi - jnp.max(pi, axis=-1, keepdims=True)
    e = jnp.exp(pi)
    inv = pl.reciprocal(jnp.sum(e, axis=-1, keepdims=True), approx=True)
    att = e * inv                                     # (T, N)

    # Attention-weighted neighbor aggregation (uses raw nei_h, as in torch).
    nei_rep = jnp.sum(att[:, :, None] * nh, axis=1)   # (T, D)

    # One batched projection for all T triples, then ELU and the T-sum.
    z = jnp.dot(nei_rep + t_rows, w,
                preferred_element_type=jnp.float32)   # (T, D)
    emb = jnp.where(z > 0.0, z, jnp.exp(z) - 1.0)     # ELU(alpha=1)

    o_ref[0, :, :] = jnp.sum(emb, axis=0, keepdims=True)   # (1, D)


# --------------------------------------------------------------------------
# Wrappers
# --------------------------------------------------------------------------
def knowledge_gat_pallas(nei_h, nei_r, nei_t, t_emb, w_gat, a_gat, ng):
    """Pallas version of CKGAT._knowledge_gat.  Returns (B, D)."""
    B, T, N, D = nei_h.shape
    a_rows = a_gat.reshape(3, D)          # (3D, 1) -> rows a_h, a_r, a_t
    wa = a_rows @ w_gat.T                 # (3, D): rows = W_GAT @ a_{h,r,t}

    out = pl.pallas_call(
        functools.partial(_gat_kernel, ng=float(ng)),
        out_shape=jax.ShapeDtypeStruct((B, 1, D), jnp.float32),
        grid=(B,),
        in_specs=[
            pl.BlockSpec((1, T, N, D), lambda b: (b, 0, 0, 0)),
            pl.BlockSpec((1, T, N, D), lambda b: (b, 0, 0, 0)),
            pl.BlockSpec((1, T, N, D), lambda b: (b, 0, 0, 0)),
            pl.BlockSpec((1, T, D), lambda b: (b, 0, 0)),
            pl.BlockSpec((D, D), lambda b: (0, 0)),
            pl.BlockSpec((3, D), lambda b: (0, 0)),
        ],
        out_specs=pl.BlockSpec((1, 1, D), lambda b: (b, 0, 0)),
        compiler_params=pltpu.CompilerParams(
            dimension_semantics=("parallel",)),
    )(nei_h, nei_r, nei_t, t_emb, w_gat, wa)
    return out.reshape(B, D)


def predict_scores(e_u, e_v):
    # Final sigmoid(dot) on (B, D)=(2, 32): done in plain JAX — a standalone
    # pallas_call here is pure launch/DMA overhead (perf-review item).
    return jax.nn.sigmoid(jnp.sum(e_u * e_v, axis=1))


# --------------------------------------------------------------------------
# Model glue (parameters, embedding lookups, aggregation)
# --------------------------------------------------------------------------
def xavier_uniform(key, shape):
    fan_out, fan_in = shape[0], shape[1]
    bound = math.sqrt(6.0 / (fan_in + fan_out))
    return jax.random.uniform(key, shape, jnp.float32, -bound, bound)


def init_params(key, n_entity, n_relation, dim):
    ks = jax.random.split(key, 8)
    return {
        "entity_emb": xavier_uniform(ks[0], (n_entity, dim)),
        "relation_emb": xavier_uniform(ks[1], (n_relation, dim)),
        "W_GAT": xavier_uniform(ks[2], (dim, dim)),
        "a_GAT": xavier_uniform(ks[3], (3 * dim, 1)),
        # Present in __init__ but unused in forward with agg='sum':
        "W_agg": xavier_uniform(ks[4], (dim, dim)),
        "w_agg": xavier_uniform(ks[5], (dim, 1)),
        "att_w0": xavier_uniform(ks[6], (dim, 2 * dim)),   # attention MLP (unused)
        "att_w1": xavier_uniform(ks[7], (dim, dim)),
    }


def ckgat_forward(params, items, user_ts, item_ts, *, n_layer, agg, ng,
                  gat_fn, score_fn):
    ent = params["entity_emb"]
    rel = params["relation_emb"]
    W = params["W_GAT"]
    a = params["a_GAT"]

    lookup_e = lambda idx: jnp.take(ent, idx, axis=0)
    lookup_r = lambda idx: jnp.take(rel, idx, axis=0)

    user_embs = [lookup_e(user_ts[0][0]).mean(axis=1)]
    for i in range(n_layer):
        t_emb = lookup_e(user_ts[2][i])
        nei_h = lookup_e(user_ts[3][i])
        nei_r = lookup_r(user_ts[4][i])
        nei_t = lookup_e(user_ts[5][i])
        user_embs.append(gat_fn(nei_h, nei_r, nei_t, t_emb, W, a, ng))

    item_embs = [lookup_e(items)]
    for i in range(n_layer):
        t_emb = lookup_e(item_ts[2][i])
        nei_h = lookup_e(item_ts[3][i])
        nei_r = lookup_r(item_ts[4][i])
        nei_t = lookup_e(item_ts[5][i])
        item_embs.append(gat_fn(nei_h, nei_r, nei_t, t_emb, W, a, ng))

    if n_layer > 0 and agg in ("sum", "pool"):
        item_embs.append(lookup_e(item_ts[0][0]).mean(axis=1))

    # TODO(synk): only agg='sum' is implemented; 'concat'/'pool'/'attention'
    # aggregation branches (and the unused nn.Sequential attention MLP) are
    # not exercised by this synthetic forward.
    assert agg == "sum"
    e_u = user_embs[0]
    for u in user_embs[1:]:
        e_u = e_u + u
    e_v = item_embs[0]
    for v in item_embs[1:]:
        e_v = e_v + v
    return score_fn(e_u, e_v)


# --------------------------------------------------------------------------
# Pure-JAX reference (mirrors the PyTorch math) for a correctness check
# --------------------------------------------------------------------------
def knowledge_gat_ref(nei_h, nei_r, nei_t, t_emb, w, a, ng):
    wh = nei_h @ w
    wr = nei_r @ w
    wt = nei_t @ w
    hrt = jnp.concatenate([wh, wr, wt], axis=3)          # (B,T,N,3D)
    pi = jnp.squeeze(hrt @ a, axis=3)                    # (B,T,N)
    pi = jnp.where(pi >= 0.0, pi, ng * pi)
    att = jax.nn.softmax(pi, axis=2)
    nei_rep = jnp.einsum("btn,btnd->btd", att, nei_h)
    z = (nei_rep + t_emb) @ w
    emb = jnp.where(z > 0.0, z, jnp.exp(z) - 1.0)
    return emb.sum(axis=1)


def scores_ref(e_u, e_v):
    return jax.nn.sigmoid(jnp.sum(e_u * e_v, axis=1))


# --------------------------------------------------------------------------
# Main
# --------------------------------------------------------------------------
if __name__ == "__main__":
    # Small, deterministic problem sizes.
    B, DIM, N_LAYER, T, N = 2, 32, 2, 8, 4
    N_ENTITY, N_RELATION = 100, 20
    NG = 0.2
    AGG = "sum"

    key = jax.random.PRNGKey(0)
    key, pkey = jax.random.split(key)
    params = init_params(pkey, N_ENTITY, N_RELATION, DIM)

    def make_triple_set(key):
        ts = [[] for _ in range(6)]
        for _ in range(N_LAYER):
            key, *ks = jax.random.split(key, 7)
            ts[0].append(jax.random.randint(ks[0], (B, T), 0, N_ENTITY))
            ts[1].append(jax.random.randint(ks[1], (B, T), 0, N_RELATION))
            ts[2].append(jax.random.randint(ks[2], (B, T), 0, N_ENTITY))
            ts[3].append(jax.random.randint(ks[3], (B, T, N), 0, N_ENTITY))
            ts[4].append(jax.random.randint(ks[4], (B, T, N), 0, N_RELATION))
            ts[5].append(jax.random.randint(ks[5], (B, T, N), 0, N_ENTITY))
        return key, ts

    key, user_ts = make_triple_set(key)
    key, item_ts = make_triple_set(key)
    key, ikey = jax.random.split(key)
    items = jax.random.randint(ikey, (B,), 0, N_ENTITY)

    scores_pallas = ckgat_forward(
        params, items, user_ts, item_ts,
        n_layer=N_LAYER, agg=AGG, ng=NG,
        gat_fn=knowledge_gat_pallas, score_fn=predict_scores)
    scores_pallas = jax.block_until_ready(scores_pallas)

    scores_jax = ckgat_forward(
        params, items, user_ts, item_ts,
        n_layer=N_LAYER, agg=AGG, ng=NG,
        gat_fn=knowledge_gat_ref, score_fn=scores_ref)
    scores_jax = jax.block_until_ready(scores_jax)

    assert scores_pallas.shape == (B,)
    assert jnp.allclose(scores_pallas, scores_jax, atol=2e-3, rtol=2e-3), (
        scores_pallas, scores_jax)

    print("KERNEL_OK")
</pallas_src>

<mosaic_0001>
module attributes {stable_mosaic.version = 11 : i64} {
  func.func @_gat_kernel(%arg0: i32, %arg1: memref<1x8x4x32xf32, #tpu.memory_space<vmem>>, %arg2: memref<1x8x4x32xf32, #tpu.memory_space<vmem>>, %arg3: memref<1x8x4x32xf32, #tpu.memory_space<vmem>>, %arg4: memref<1x8x32xf32, #tpu.memory_space<vmem>>, %arg5: memref<32x32xf32, #tpu.memory_space<vmem>>, %arg6: memref<3x32xf32, #tpu.memory_space<vmem>>, %arg7: memref<1x1x32xf32, #tpu.memory_space<vmem>>) attributes {dimension_semantics = [#tpu.dimension_semantics<parallel>], iteration_bounds = array<i64: 2>, scalar_prefetch = 0 : i64, scratch_operands = 0 : i64, tpu.core_type = #tpu.core_type<tc>, window_params = [{transform_indices = @transform_0, window_bounds = array<i64: 1, 8, 4, 32>}, {transform_indices = @transform_1, window_bounds = array<i64: 1, 8, 4, 32>}, {transform_indices = @transform_2, window_bounds = array<i64: 1, 8, 4, 32>}, {transform_indices = @transform_3, window_bounds = array<i64: 1, 8, 32>}, {pipeline_mode = #tpu.pipeline_mode<synchronous>, transform_indices = @transform_4, window_bounds = array<i64: 32, 32>}, {pipeline_mode = #tpu.pipeline_mode<synchronous>, transform_indices = @transform_5, window_bounds = array<i64: 3, 32>}, {transform_indices = @transform_6, window_bounds = array<i64: 1, 1, 32>}]} {
    %c0 = arith.constant 0 : index
    %c0_0 = arith.constant 0 : index
    %c0_1 = arith.constant 0 : index
    %c0_2 = arith.constant 0 : index
    %0 = vector.load %arg1[%c0, %c0_0, %c0_1, %c0_2] : memref<1x8x4x32xf32, #tpu.memory_space<vmem>>, vector<1x8x4x32xf32>
    %1 = vector.shape_cast %0 : vector<1x8x4x32xf32> to vector<8x4x32xf32>
    %c0_3 = arith.constant 0 : index
    %c0_4 = arith.constant 0 : index
    %c0_5 = arith.constant 0 : index
    %c0_6 = arith.constant 0 : index
    %2 = vector.load %arg2[%c0_3, %c0_4, %c0_5, %c0_6] : memref<1x8x4x32xf32, #tpu.memory_space<vmem>>, vector<1x8x4x32xf32>
    %3 = vector.shape_cast %2 : vector<1x8x4x32xf32> to vector<8x4x32xf32>
    %c0_7 = arith.constant 0 : index
    %c0_8 = arith.constant 0 : index
    %c0_9 = arith.constant 0 : index
    %c0_10 = arith.constant 0 : index
    %4 = vector.load %arg3[%c0_7, %c0_8, %c0_9, %c0_10] : memref<1x8x4x32xf32, #tpu.memory_space<vmem>>, vector<1x8x4x32xf32>
    %5 = vector.shape_cast %4 : vector<1x8x4x32xf32> to vector<8x4x32xf32>
    %c0_11 = arith.constant 0 : index
    %c0_12 = arith.constant 0 : index
    %c0_13 = arith.constant 0 : index
    %6 = vector.load %arg4[%c0_11, %c0_12, %c0_13] : memref<1x8x32xf32, #tpu.memory_space<vmem>>, vector<1x8x32xf32>
    %7 = vector.shape_cast %6 : vector<1x8x32xf32> to vector<8x32xf32>
    %c0_14 = arith.constant 0 : index
    %c0_15 = arith.constant 0 : index
    %8 = vector.load %arg5[%c0_14, %c0_15] : memref<32x32xf32, #tpu.memory_space<vmem>>, vector<32x32xf32>
    %c0_16 = arith.constant 0 : index
    %c0_17 = arith.constant 0 : index
    %9 = vector.load %arg6[%c0_16, %c0_17] : memref<3x32xf32, #tpu.memory_space<vmem>>, vector<1x32xf32>
    %c1 = arith.constant 1 : index
    %c0_18 = arith.constant 0 : index
    %10 = vector.load %arg6[%c1, %c0_18] : memref<3x32xf32, #tpu.memory_space<vmem>>, vector<1x32xf32>
    %c2 = arith.constant 2 : index
    %c0_19 = arith.constant 0 : index
    %11 = vector.load %arg6[%c2, %c0_19] : memref<3x32xf32, #tpu.memory_space<vmem>>, vector<1x32xf32>
    %12 = vector.shape_cast %9 : vector<1x32xf32> to vector<1x1x32xf32>
    %13 = vector.broadcast %12 : vector<1x1x32xf32> to vector<8x4x32xf32>
    %14 = arith.mulf %1, %13 : vector<8x4x32xf32>
    %cst = arith.constant dense<0.000000e+00> : vector<8x4xf32>
    %15 = vector.multi_reduction <add>, %14, %cst [2] : vector<8x4x32xf32> to vector<8x4xf32>
    %16 = vector.shape_cast %10 : vector<1x32xf32> to vector<1x1x32xf32>
    %17 = vector.broadcast %16 : vector<1x1x32xf32> to vector<8x4x32xf32>
    %18 = arith.mulf %3, %17 : vector<8x4x32xf32>
    %cst_20 = arith.constant dense<0.000000e+00> : vector<8x4xf32>
    %19 = vector.multi_reduction <add>, %18, %cst_20 [2] : vector<8x4x32xf32> to vector<8x4xf32>
    %20 = arith.addf %15, %19 : vector<8x4xf32>
    %21 = vector.shape_cast %11 : vector<1x32xf32> to vector<1x1x32xf32>
    %22 = vector.broadcast %21 : vector<1x1x32xf32> to vector<8x4x32xf32>
    %23 = arith.mulf %5, %22 : vector<8x4x32xf32>
    %cst_21 = arith.constant dense<0.000000e+00> : vector<8x4xf32>
    %24 = vector.multi_reduction <add>, %23, %cst_21 [2] : vector<8x4x32xf32> to vector<8x4xf32>
    %25 = arith.addf %20, %24 : vector<8x4xf32>
    %cst_22 = arith.constant 0.000000e+00 : f32
    %26 = vector.broadcast %cst_22 : f32 to vector<8x4xf32>
    %27 = arith.cmpf oge, %25, %26 : vector<8x4xf32>
    %cst_23 = arith.constant 2.000000e-01 : f32
    %28 = vector.broadcast %cst_23 : f32 to vector<8x4xf32>
    %29 = arith.mulf %28, %25 : vector<8x4xf32>
    %30 = arith.select %27, %25, %29 : vector<8x4xi1>, vector<8x4xf32>
    %cst_24 = arith.constant dense<0xFF800000> : vector<8xf32>
    %31 = vector.multi_reduction <maximumf>, %30, %cst_24 [1] : vector<8x4xf32> to vector<8xf32>
    %32 = vector.shape_cast %31 : vector<8xf32> to vector<8x1xf32>
    %33 = vector.broadcast %32 : vector<8x1xf32> to vector<8x4xf32>
    %34 = arith.subf %30, %33 : vector<8x4xf32>
    %35 = math.exp %34 : vector<8x4xf32>
    %cst_25 = arith.constant dense<0.000000e+00> : vector<8xf32>
    %36 = vector.multi_reduction <add>, %35, %cst_25 [1] : vector<8x4xf32> to vector<8xf32>
    %37 = vector.shape_cast %36 : vector<8xf32> to vector<8x1xf32>
    %38 = tpu.reciprocal %37 {approx = true} : vector<8x1xf32> -> vector<8x1xf32>
    %39 = vector.broadcast %38 : vector<8x1xf32> to vector<8x4xf32>
    %40 = arith.mulf %35, %39 : vector<8x4xf32>
    %41 = vector.shape_cast %40 : vector<8x4xf32> to vector<8x4x1xf32>
    %42 = vector.broadcast %41 : vector<8x4x1xf32> to vector<8x4x32xf32>
    %43 = arith.mulf %42, %1 : vector<8x4x32xf32>
    %cst_26 = arith.constant dense<0.000000e+00> : vector<8x32xf32>
    %44 = vector.multi_reduction <add>, %43, %cst_26 [1] : vector<8x4x32xf32> to vector<8x32xf32>
    %45 = arith.addf %44, %7 : vector<8x32xf32>
    %cst_27 = arith.constant dense<0.000000e+00> : vector<8x32xf32>
    %46 = tpu.matmul %45, %8, %cst_27 {dimension_numbers = #tpu.dot_dimension_numbers<[1], [0], [0], [1], [0, 0, 1, 1], [], []>} : vector<8x32xf32>, vector<32x32xf32>, vector<8x32xf32> -> vector<8x32xf32>
    %cst_28 = arith.constant 0.000000e+00 : f32
    %47 = vector.broadcast %cst_28 : f32 to vector<8x32xf32>
    %48 = arith.cmpf ogt, %46, %47 : vector<8x32xf32>
    %49 = math.exp %46 : vector<8x32xf32>
    %cst_29 = arith.constant 1.000000e+00 : f32
    %50 = vector.broadcast %cst_29 : f32 to vector<8x32xf32>
    %51 = arith.subf %49, %50 : vector<8x32xf32>
    %52 = arith.select %48, %46, %51 : vector<8x32xi1>, vector<8x32xf32>
    %cst_30 = arith.constant dense<0.000000e+00> : vector<32xf32>
    %53 = vector.multi_reduction <add>, %52, %cst_30 [0] : vector<8x32xf32> to vector<32xf32>
    %54 = vector.shape_cast %53 : vector<32xf32> to vector<1x32xf32>
    %c0_31 = arith.constant 0 : index
    %c0_32 = arith.constant 0 : index
    %c0_33 = arith.constant 0 : index
    %55 = vector.load %arg7[%c0_31, %c0_32, %c0_33] : memref<1x1x32xf32, #tpu.memory_space<vmem>>, vector<1x1x32xf32>
    %56 = vector.shape_cast %55 : vector<1x1x32xf32> to vector<1x32xf32>
    %57 = vector.shape_cast %54 : vector<1x32xf32> to vector<1x1x32xf32>
    tpu.vector_store %arg7[%c0_31, %c0_32, %c0_33], %57 {strides = array<i32>} : memref<1x1x32xf32, #tpu.memory_space<vmem>>, vector<1x1x32xf32>,
    return
  }
  func.func @transform_0(%arg0: i32) -> (i32, i32, i32, i32) {
    %c0_i32 = arith.constant 0 : i32
    %c0_i32_0 = arith.constant 0 : i32
    %c0_i32_1 = arith.constant 0 : i32
    %c0_i32_2 = arith.constant 0 : i32
    return %arg0, %c0_i32, %c0_i32_0, %c0_i32_1 : i32, i32, i32, i32
  }
  func.func @transform_1(%arg0: i32) -> (i32, i32, i32, i32) {
    %c0_i32 = arith.constant 0 : i32
    %c0_i32_0 = arith.constant 0 : i32
    %c0_i32_1 = arith.constant 0 : i32
    %c0_i32_2 = arith.constant 0 : i32
    return %arg0, %c0_i32, %c0_i32_0, %c0_i32_1 : i32, i32, i32, i32
  }
  func.func @transform_2(%arg0: i32) -> (i32, i32, i32, i32) {
    %c0_i32 = arith.constant 0 : i32
    %c0_i32_0 = arith.constant 0 : i32
    %c0_i32_1 = arith.constant 0 : i32
    %c0_i32_2 = arith.constant 0 : i32
    return %arg0, %c0_i32, %c0_i32_0, %c0_i32_1 : i32, i32, i32, i32
  }
  func.func @transform_3(%arg0: i32) -> (i32, i32, i32) {
    %c0_i32 = arith.constant 0 : i32
    %c0_i32_0 = arith.constant 0 : i32
    %c0_i32_1 = arith.constant 0 : i32
    return %arg0, %c0_i32, %c0_i32_0 : i32, i32, i32
  }
  func.func @transform_4(%arg0: i32) -> (i32, i32) {
    %c0_i32 = arith.constant 0 : i32
    %c0_i32_0 = arith.constant 0 : i32
    %c0_i32_1 = arith.constant 0 : i32
    return %c0_i32, %c0_i32_0 : i32, i32
  }
  func.func @transform_5(%arg0: i32) -> (i32, i32) {
    %c0_i32 = arith.constant 0 : i32
    %c0_i32_0 = arith.constant 0 : i32
    %c0_i32_1 = arith.constant 0 : i32
    return %c0_i32, %c0_i32_0 : i32, i32
  }
  func.func @transform_6(%arg0: i32) -> (i32, i32, i32) {
    %c0_i32 = arith.constant 0 : i32
    %c0_i32_0 = arith.constant 0 : i32
    %c0_i32_1 = arith.constant 0 : i32
    return %arg0, %c0_i32, %c0_i32_0 : i32, i32, i32
  }
}

</mosaic_0001>

<bundles_post_ra>
// kernel: tpu_custom_call.1
= control target key start
LH: loop header
LB: loop body
LE: loop exit
PB: predicated region body
PF: predicated region fallthrough
CT: control target
= control target key end

     0   :  { %s1882_s0 = inlined_call_operand.hbm [shape: f32[2,8,4,32], index: 0, kind: input, shape index: {}]   ;;  %s1883_s1 = inlined_call_operand.hbm [shape: f32[2,8,4,32], index: 1, kind: input, shape index: {}]   ;;  %s1884_s2 = inlined_call_operand.hbm [shape: f32[2,8,4,32], index: 2, kind: input, shape index: {}]   ;;  %s1885_s3 = inlined_call_operand.hbm [shape: f32[2,8,32], index: 3, kind: input, shape index: {}]   ;;  %s1886_s4 = inlined_call_operand.hbm [shape: f32[32,32], index: 4, kind: input, shape index: {}]   ;;  %s1887_s5 = inlined_call_operand.vmem [shape: f32[3,32], index: 5, kind: input, shape index: {}]   ;;  %s1888_s6 = inlined_call_operand.hbm [shape: f32[2,1,32], index: 6, kind: output, shape index: {}]  }
   0x1   :  { %1894 = sst [smem:[#allocation21_spill]] %s1882_s0 }
   0x2   :  { %1895 = sst [smem:[#allocation22_spill]] %s1883_s1 }
   0x3   :  { %1896 = sst [smem:[#allocation23_spill]] %s1886_s4 }
   0x4   :  { %11 = vsyncpa [#allocation3], 0 }
   0x5   :  { %13 = vsyncpa [#allocation3 + $0x1], 0 }
   0x6   :  { %14 = vsyncpa [#allocation6], 0 }
   0x7   :  { %16 = vsyncpa [#allocation6 + $0x1], 0 }
   0x8   :  { %17 = vsyncpa [#allocation9], 0 }
   0x9   :  { %19 = vsyncpa [#allocation9 + $0x1], 0 }
   0xa   :  { %20 = vsyncpa [#allocation4], 0 }
   0xb   :  { %22 = vsyncpa [#allocation4 + $0x1], 0  ;;  %s1477_s21 = smov 0   ;;  %s1479_s22 = smov 0  }
   0xc   :  { %s1481_s23 = smov 0   ;;  %s1483_s24 = smov 0  }
   0xd LB: > { %1897 = sst [smem:[#allocation17_spill]] %s1430_s23  ;;  %s1498_s25 = sadd.s32 4294967295, %s1434_s24   ;;  %s1434_s24 = sphi %s1483_s24, %s1912_s24   ;;  %s1430_s23 = sphi %s1481_s23, %s1914_s23   ;;  %s1426_s22 = sphi %s1479_s22, %s1916_s22   ;;  %s1422_s21 = sphi %s1477_s21, %s1915_s21  }
   0xe   : > { %s1075_s26 = sadd.s32 4294967294, %s1434_s24   ;;  %p48_p0 = scmp.ne.s32.totalorder %s1426_s22, %s1422_s21 }
   0xf   : > { %p49_p1 = scmp.eq.s32.totalorder %s1498_s25, 0  ;;  %p192_p2 = scmp.eq.s32.totalorder %s1498_s25, 1 }
  0x10   : > { %p198_p3 = scmp.eq.s32.totalorder %s1075_s26, 1  ;;  %p1076_p5 = scmp.ge.s32.totalorder %s1434_s24, 1 }
  0x11   : > { %p1507_p4 = por %p49_p1, %p48_p0  ;;  %p205_p7 = scmp.lt.s32.totalorder %s1434_s24, 3 }
  0x12   : > { %p1512_p6 = por %p198_p3, %p48_p0  ;;  %s1901_s4 = sld [smem:[#allocation23_spill]] }
  0x13   : > { %p1520_p8 = pnand %p1076_p5, %p205_p7  ;;  %s1436_s9 = smov [#allocation10]  }
  0x14   : > { %s1899_s28 = scalar_select %p1512_p6, 1, 0 }
  0x15   : > { %p1117_p9 = pneg %p1520_p8  ;;  %s218_s10 = sshll.u32 %s1436_s9, 4  ;;  %s219_s10 = int_to_ptr.vmem [resolvable:$true] %s218_s10 }
  0x16   : > { %1900 = sst [smem:[#allocation18_spill]] %s1899_s28  ;;  %s1530_s11 = sadd.s32 1, %s1434_s24  }
  0x17   : > { %p1118_p10 = pnand %p1117_p9, %p49_p1  ;;  %1903 = sst [smem:[#allocation19_spill]] %s1530_s11 }
  0x18   : > { %s216_s7 = sshll.u32 %s1901_s4, 4  ;;  %s1437_s12 = smov 128   ;;  %s217_s7 = int_to_ptr.hbm [resolvable:$true] %s216_s7 }
  0x19   : > { %s1438_s13 = smov 8   ;;  %s32_s14 = ssub.s32 %s1434_s24, %s1530_s11 }
  0x1a   : > { %1120 = dma.hbm_to_vmem [thread:$0]  (!%p1118_p10), %s217_s7, 512, %s219_s10, [#allocation9], %s1437_s12, %s1437_s12, %s1438_s13  }
  0x1b   : > { %s35_s15 = sadd.s32 1, %s1430_s23  ;;  %p33_p12 = scmp.eq.s32.totalorder %s32_s14, 0 }
  0x1c   : > { %p42_p13 = scmp.ne.s32.totalorder %s1430_s23, %s1426_s22  ;;  %p43_p0 = scmp.eq.s32.totalorder %s1434_s24, 0 }
  0x1d   : > { %p1139_p3 = scmp.lt.s32.totalorder %s1434_s24, 2  ;;  %s1549_s18 = sand.u32 1, %s1430_s23  }
  0x1e   : > { %s1540_s16 = scalar_select %p33_p12, %s1430_s23, %s35_s15  }
  0x1f   : > { %p44_p5 = por %p43_p0, %p42_p13  ;;  %p1544_p7 = por %p192_p2, %p42_p13 }
  0x20   : > { %1904 = sst [smem:[#allocation20_spill]] %s1540_s16  ;;  %s1552_s19 = sshll.u32 %s1434_s24, 5 }
  0x21   : > { %s1555_s20 = sshll.u32 %s1549_s18, 5  ;;  %p1557_p9 = pnand %p1139_p3, %p44_p5 }
  0x22   : > { %s1889_s29 = sand.u32 1, %s1434_s24   ;;  %s1907_s1 = sld [smem:[#allocation22_spill]] }
  0x23   : > { %s261_s10 = scalar_lea.vmem [#allocation5], %s1555_s20  ;;  %s1569_s14 = scalar_lea.sflag [#allocation6], %s1889_s29 }
  0x24   : > { %s269_s12 = sshll.u32 %s261_s10, 4  ;;  %p1240_p10 = pneg %p1557_p9  ;;  %s270_s12 = int_to_ptr.vmem [resolvable:$true] %s269_s12 }
  0x28   : > { %s266_s9 = scalar_lea.hbm %s1907_s1, %s1552_s19  ;;  %s1243_s10 = scalar_lea.hbm %s1907_s1, 64 }
  0x29   : > { %s267_s13 = sshll.u32 %s266_s9, 4  ;;  %s268_s13 = int_to_ptr.hbm [resolvable:$true] %s267_s13 }
  0x2a   : > { %s1236_s15 = sshra.s32 %s268_s13, 4  ;;  %s1237_s15 = int_to_ptr.hbm [resolvable:$true] %s1236_s15 }
  0x2b   : > { %s1238_s4 = scalar_lea.hbm %s1237_s15, 32  ;;  %p1244_p0 = scmp.lt.s32.totalorder %s1237_s15, %s1907_s1 }
  0x2c   : > { %p1239_p2 = scmp.ne.s32.totalorder %s1237_s15, %s1238_s4  ;;  %p1245_p3 = scmp.lt.s32.totalorder %s1243_s10, %s1238_s4 }
  0x2e   : > { %p1241_p12 = pnand %p1240_p10, %p1239_p2  ;;  %p1246_p5 = por %p1245_p3, %p1244_p0 }
  0x30   : > { %p1242_p13 = pneg %p1241_p12 }
  0x32   : > { %p1247_p11 = pnand %p1246_p5, %p1242_p13 }
  0x34   : > { %1250 = shalt.err (!%p1247_p11)
}
  0x35   : > { %s1439_s29 = smov 64   ;;  %s1440_s23 = smov 4  }
  0x36   : > { %1127 = dma.hbm_to_vmem [thread:$0]  (!%p1557_p9), %s268_s13, 512, %s270_s12, %s1569_s14, %s1439_s29, %s1439_s29, %s1440_s23  }
  0x37   : > { %s1908_s0 = sld [smem:[#allocation21_spill]]  ;;  %s239_s7 = scalar_lea.vmem [#allocation2], %s1555_s20 }
  0x38   : > { %s247_s10 = sshll.u32 %s239_s7, 4  ;;  %s236_s9 = scalar_lea.sflag [#allocation3], %s1549_s18  ;;  %s248_s10 = int_to_ptr.vmem [resolvable:$true] %s247_s10 }
  0x3d   : > { %s244_s4 = scalar_lea.hbm %s1908_s0, %s1552_s19  ;;  %s1273_s13 = scalar_lea.hbm %s1908_s0, 64 }
  0x3e   : > { %s245_s15 = sshll.u32 %s244_s4, 4  ;;  %s246_s15 = int_to_ptr.hbm [resolvable:$true] %s245_s15 }
  0x3f   : > { %s1266_s1 = sshra.s32 %s246_s15, 4  ;;  %s1267_s1 = int_to_ptr.hbm [resolvable:$true] %s1266_s1 }
  0x40   : > { %s1268_s11 = scalar_lea.hbm %s1267_s1, 32  ;;  %p1274_p13 = scmp.lt.s32.totalorder %s1267_s1, %s1908_s0 }
  0x41   : > { %p1269_p11 = scmp.ne.s32.totalorder %s1267_s1, %s1268_s11  ;;  %p1275_p0 = scmp.lt.s32.totalorder %s1273_s13, %s1268_s11 }
  0x43   : > { %p1271_p2 = pnand %p1269_p11, %p1240_p10  ;;  %p1276_p3 = por %p1275_p0, %p1274_p13 }
  0x45   : > { %p1272_p12 = pneg %p1271_p2 }
  0x47   : > { %p1277_p5 = pnand %p1276_p3, %p1272_p12 }
  0x49   : > { %1280 = shalt.err (!%p1277_p5)
}
  0x4a   : > { %1124 = dma.hbm_to_vmem [thread:$0]  (!%p1557_p9), %s246_s15, 512, %s248_s10, %s236_s9, %s1439_s29, %s1439_s29, %s1440_s23  }
  0x4b   : > { %s288_s7 = scalar_lea.hbm %s1884_s2, %s1552_s19  ;;  %s283_s30 = scalar_lea.vmem [#allocation7], %s1555_s20 }
  0x4c   : > { %s289_s12 = sshll.u32 %s288_s7, 4  ;;  %s291_s1 = sshll.u32 %s283_s30, 4  ;;  %s290_s12 = int_to_ptr.hbm [resolvable:$true] %s289_s12  ;;  %s292_s1 = int_to_ptr.vmem [resolvable:$true] %s291_s1 }
  0x4d   : > { %s1296_s11 = sshra.s32 %s290_s12, 4  ;;  %s1303_s15 = scalar_lea.hbm %s1884_s2, 64  ;;  %s1297_s11 = int_to_ptr.hbm [resolvable:$true] %s1296_s11 }
  0x4e   : > { %s1298_s13 = scalar_lea.hbm %s1297_s11, 32  ;;  %p1304_p13 = scmp.lt.s32.totalorder %s1297_s11, %s1884_s2 }
  0x4f   : > { %p1299_p11 = scmp.ne.s32.totalorder %s1297_s11, %s1298_s13  ;;  %p1305_p0 = scmp.lt.s32.totalorder %s1303_s15, %s1298_s13 }
  0x51   : > { %p1301_p2 = pnand %p1299_p11, %p1240_p10  ;;  %p1306_p3 = por %p1305_p0, %p1304_p13 }
  0x53   : > { %p1302_p12 = pneg %p1301_p2 }
  0x55   : > { %p1307_p5 = pnand %p1306_p3, %p1302_p12 }
  0x57   : > { %1310 = shalt.err (!%p1307_p5)
}
  0x58   : > { %1130 = dma.hbm_to_vmem [thread:$0]  (!%p1557_p9), %s290_s12, 512, %s292_s1, %s1569_s14, %s1439_s29, %s1439_s29, %s1440_s23  }
  0x59   : > { %s1088_s0 = sshll.u32 %s1549_s18, 3  ;;  %s1089_s19 = sshll.u32 %s1434_s24, 3 }
  0x5a   : > { %s309_s28 = scalar_lea.hbm %s1885_s3, %s1089_s19  ;;  %s305_s7 = scalar_lea.vmem [#allocation8], %s1088_s0 }
  0x5b   : > { %s313_s30 = sshll.u32 %s305_s7, 4  ;;  %s311_s11 = sshll.u32 %s309_s28, 4  ;;  %s314_s30 = int_to_ptr.vmem [resolvable:$true] %s313_s30  ;;  %s312_s11 = int_to_ptr.hbm [resolvable:$true] %s311_s11 }
  0x5c   : > { %s1909_s13 = sand.u32 1, %s1434_s24   ;;  %s1326_s15 = sshra.s32 %s312_s11, 4  ;;  %s1327_s15 = int_to_ptr.hbm [resolvable:$true] %s1326_s15 }
  0x5d   : > { %s302_s16 = scalar_lea.sflag [#allocation9], %s1909_s13  ;;  %s1328_s10 = scalar_lea.hbm %s1327_s15, 8 }
  0x5e   : > { %p1329_p11 = scmp.ne.s32.totalorder %s1327_s15, %s1328_s10  ;;  %s1333_s29 = scalar_lea.hbm %s1885_s3, 16 }
  0x5f   : > { %p1334_p13 = scmp.lt.s32.totalorder %s1327_s15, %s1885_s3  ;;  %p1335_p0 = scmp.lt.s32.totalorder %s1333_s29, %s1328_s10 }
  0x60   : > { %p1331_p2 = pnand %p1329_p11, %p1240_p10 }
  0x61   : > { %p1336_p3 = por %p1335_p0, %p1334_p13 }
  0x62   : > { %p1332_p12 = pneg %p1331_p2 }
  0x64   : > { %p1337_p5 = pnand %p1336_p3, %p1332_p12 }
  0x66   : > { %1340 = shalt.err (!%p1337_p5)
}
  0x67   : > { %1133 = dma.hbm_to_vmem [thread:$0]  (!%p1557_p9), %s312_s11, 128, %s314_s30, %s302_s16  }
  0x68   : > { %322 = sbr.rel (%p1520_p8) target bundleno = 1015 (0x3f7), region = 44  ;;  %s1649_s1 = sand.u32 (!%p1520_p8), 1, %s1426_s22  }
  0x69   : > { %s1091_s9 = sshll.u32 (!%p1520_p8), %s1649_s1, 5  ;;  %s325_s0 = scalar_lea.sflag (!%p1520_p8), [#allocation3], %s1649_s1 }
  0x6a   : > { %s1653_s19 = scalar_lea.vmem (!%p1520_p8), [#allocation2], %s1091_s9 }
  0x6d   : > { %1401 = dma.done.wait (%p1507_p4), %s325_s0, 512  }
  0x6e   : > { %1403 = vsyncadd (%p1507_p4), %s325_s0, 4294966784  ;;  %s334_s26 = sand.u32 1, %s1498_s25   ;;  %s1660_s20 = scalar_lea.vmem [#allocation5], %s1091_s9 }
  0x6f   : > { %s335_s8 = scalar_lea.sflag [#allocation6], %s334_s26 }
  0x70   : > { %1405 = dma.done.wait (%p1507_p4), %s335_s8, 1024  }
  0x71   : > { %1407 = vsyncadd (%p1507_p4), %s335_s8, 4294966272  ;;  %s1094_s4 = sshll.u32 %s1649_s1, 3  ;;  %s1667_s28 = scalar_lea.vmem [#allocation7], %s1091_s9 }
  0x72   : > { %s355_s7 = scalar_lea.sflag [#allocation9], %s334_s26  ;;  %s1669_s30 = scalar_lea.vmem [#allocation8], %s1094_s4 }
  0x73   : > { %1409 = dma.done.wait (%p1507_p4), %s355_s7, 128  }
  0x74   : > { %1411 = vsyncadd (%p1507_p4), %s355_s7, 4294967168 }
  0x75   : > { %1413 = dma.done.wait (%p49_p1), [#allocation9], 512  }
  0x76   : > { %1415 = vsyncadd (%p49_p1), [#allocation9], 4294966784  ;;  %vm448_vm0 = vcmask 257024   ;;  %v415_v0 = vld [vmem:[%s1660_s20] sm:$0xf]  ;;  %vm597_vm6 = vcmask 1041409   ;;  %s930_s29 = scalar_lea.hbm %s1888_s6, %s1498_s25 }
  0x77   : > { %v1683_v1 = vld [vmem:[%s1887_s5 + $0x1] ss:$0 sm:$0xff]  ;;  %v1686_v2 = vld [vmem:[%s1653_s19 + $0x8] sm:$0xf]  ;;  %v1691_v3 = vld [vmem:[%s1887_s5] ss:$0 sm:$0xff] }
  0x78   : > { %v474_v4 = vmul.f32 %v1683_v1, %v415_v0  ;;  %v1695_v5 = vld [vmem:[%s1653_s19] sm:$0xf]  ;;  %v442_v6 = vmul.f32 %v1691_v3, %v1686_v2  ;;  %v416_v8 = vld [vmem:[%s1660_s20 + $0x4] sm:$0xf]  ;;  %v417_v9 = vld [vmem:[%s1660_s20 + $0x8] sm:$0xf] }
  0x79   : > { %v440_v7 = vmul.f32 %v1691_v3, %v1695_v5  ;;  %v1705_v11 = vld [vmem:[%s1653_s19 + $0x4] sm:$0xf]  ;;  %v475_v14 = vmul.f32 %v1683_v1, %v416_v8  ;;  %v476_v15 = vmul.f32 %v1683_v1, %v417_v9  ;;  %v418_v20 = vld [vmem:[%s1660_s20 + $0xc] sm:$0xf]  ;;  %v1720_v21 = vld [vmem:[%s1887_s5 + $0x2] ss:$0 sm:$0xff] }
  0x7a   : > { %v482_v10 = vsel %vm448_vm0, %v474_v4, 0.0  ;;  %v455_v12 = vsel %vm448_vm0, %v442_v6, 0.0  ;;  %v441_v16 = vmul.f32 %v1691_v3, %v1705_v11  ;;  %v423_v22 = vld [vmem:[%s1667_s28] sm:$0xf]  ;;  %v1724_v23 = vld [vmem:[%s1653_s19 + $0xc] sm:$0xf]  ;;  %v477_v24 = vmul.f32 %v1683_v1, %v418_v20 }
  0x7b   : > { %483 = vadd.xlane.f32.xlu1 %v482_v10  ;;  %v449_v13 = vsel %vm448_vm0, %v440_v7, 0.0  ;;  %456 = vadd.xlane.f32.xlu2 %v455_v12  ;;  %v485_v17 = vsel %vm448_vm0, %v475_v14, 0.0  ;;  %v488_v18 = vsel %vm448_vm0, %v476_v15, 0.0  ;;  %v515_v25 = vmul.f32 %v1720_v21, %v423_v22  ;;  %v1734_v30 = vld [vmem:[%s1653_s19 + $0x10] sm:$0xf]  ;;  %s406_s14 = scalar_lea.vmem [#allocation11], %s1649_s1 }
  0x7c   : > { %450 = vadd.xlane.f32.xlu0 %v449_v13  ;;  %v452_v19 = vsel %vm448_vm0, %v441_v16, 0.0  ;;  %v443_v26 = vmul.f32 %v1691_v3, %v1724_v23  ;;  %v491_v27 = vsel %vm448_vm0, %v477_v24, 0.0  ;;  %v419_v31 = vld [vmem:[%s1660_s20 + $0x10] sm:$0xf]  ;;  %v424_v32 = vld [vmem:[%s1667_s28 + $0x4] sm:$0xf]  ;;  %v444_v33 = vmul.f32 %v1691_v3, %v1734_v30 }
  0x7d   : > { %v523_v28 = vsel %vm448_vm0, %v515_v25, 0.0  ;;  %v478_v34 = vmul.f32 %v1683_v1, %v419_v31  ;;  %v516_v35 = vmul.f32 %v1720_v21, %v424_v32  ;;  %v1746_v39 = vld [vmem:[%s1653_s19 + $0x14] sm:$0xf]  ;;  %v425_v41 = vld [vmem:[%s1667_s28 + $0x8] sm:$0xf]  ;;  %vm599_vm7 = vcmask 1042434  }
  0x7e   : > { %v458_v29 = vsel %vm448_vm0, %v443_v26, 0.0  ;;  %v461_v36 = vsel %vm448_vm0, %v444_v33, 0.0  ;;  %v420_v40 = vld [vmem:[%s1660_s20 + $0x14] sm:$0xf]  ;;  %v445_v42 = vmul.f32 %v1691_v3, %v1746_v39  ;;  %v517_v44 = vmul.f32 %v1720_v21, %v425_v41  ;;  %v1758_v48 = vld [vmem:[%s1653_s19 + $0x18] sm:$0xf] }
  0x7f   : > { %v494_v37 = vsel %vm448_vm0, %v478_v34, 0.0  ;;  %v526_v38 = vsel %vm448_vm0, %v516_v35, 0.0  ;;  %v479_v43 = vmul.f32 %v1683_v1, %v420_v40  ;;  %v421_v49 = vld [vmem:[%s1660_s20 + $0x18] sm:$0xf]  ;;  %v426_v50 = vld [vmem:[%s1667_s28 + $0xc] sm:$0xf]  ;;  %v446_v51 = vmul.f32 %v1691_v3, %v1758_v48 }
  0x80   : > { %v464_v45 = vsel %vm448_vm0, %v445_v42, 0.0  ;;  %v529_v47 = vsel %vm448_vm0, %v517_v44, 0.0  ;;  %v480_v52 = vmul.f32 %v1683_v1, %v421_v49  ;;  %v518_v53 = vmul.f32 %v1720_v21, %v426_v50  ;;  %v1770_v57 = vld [vmem:[%s1653_s19 + $0x1c] sm:$0xf]  ;;  %v427_v59 = vld [vmem:[%s1667_s28 + $0x10] sm:$0xf] }
  0x81   : > { %v497_v46 = vsel %vm448_vm0, %v479_v43, 0.0  ;;  %v467_v54 = vsel %vm448_vm0, %v446_v51, 0.0  ;;  %v422_v58 = vld [vmem:[%s1660_s20 + $0x1c] sm:$0xf]  ;;  %v447_v60 = vmul.f32 %v1691_v3, %v1770_v57  ;;  %v519_v62 = vmul.f32 %v1720_v21, %v427_v59  ;;  %v429_v6 = vld [vmem:[%s1667_s28 + $0x18] sm:$0xf] }
  0x82   : > { %v500_v55 = vsel %vm448_vm0, %v480_v52, 0.0  ;;  %v532_v56 = vsel %vm448_vm0, %v518_v53, 0.0  ;;  %v481_v61 = vmul.f32 %v1683_v1, %v422_v58  ;;  %v430_v7 = vld [vmem:[%s1667_s28 + $0x1c] sm:$0xf]  ;;  %v428_v8 = vld [vmem:[%s1667_s28 + $0x14] sm:$0xf]  ;;  %v521_v9 = vmul.f32 %v1720_v21, %v429_v6 }
  0x83   : > { %486 = vadd.xlane.f32.xlu1 %v485_v17  ;;  %489 = vadd.xlane.f32.xlu2 %v488_v18  ;;  %v470_v63 = vsel %vm448_vm0, %v447_v60, 0.0  ;;  %v535_v4 = vsel %vm448_vm0, %v519_v62, 0.0  ;;  %v522_v3 = vmul.f32 %v1720_v21, %v430_v7  ;;  %v520_v1 = vmul.f32 %v1720_v21, %v428_v8  ;;  %s932_s12 = sshll.u32 %s406_s14, 4  ;;  %s934_s9 = sshll.u32 %s930_s29, 4  ;;  %s933_s12 = int_to_ptr.vmem [resolvable:$true] %s932_s12  ;;  %s935_s9 = int_to_ptr.hbm [resolvable:$true] %s934_s9 }
  0x84   : > { %453 = vadd.xlane.f32.xlu0 %v452_v19  ;;  %v503_v0 = vsel %vm448_vm0, %v481_v61, 0.0  ;;  %v541_v10 = vsel %vm448_vm0, %v521_v9, 0.0  ;;  %vm601_vm8 = vcmask 1043459   ;;  %vm603_vm12 = vcmask 1044484   ;;  %s922_s0 = scalar_lea.sflag [#allocation4], %s1649_s1  ;;  %s1370_s19 = sshra.s32 %s935_s9, 4  ;;  %s1371_s19 = int_to_ptr.hbm [resolvable:$true] %s1370_s19 }
  0x85   : > { %v544_v12 = vsel %vm448_vm0, %v522_v3, 0.0  ;;  %v538_v13 = vsel %vm448_vm0, %v520_v1, 0.0  ;;  %vm605_vm13 = vcmask 1045509   ;;  %vm607_vm14 = vcmask 1046534   ;;  %s1372_s26 = scalar_lea.hbm %s1371_s19, 1  ;;  %s1376_s20 = scalar_lea.hbm %s1888_s6, 2 }
  0x86   : > { %vm609_vm15 = vcmask 1047559   ;;  %p1373_p1 = scmp.ne.s32.totalorder %s1371_s19, %s1372_s26  ;;  %p1377_p9 = scmp.lt.s32.totalorder %s1371_s19, %s1888_s6 }
  0x87   : > { %p1378_p10 = scmp.lt.s32.totalorder %s1376_s20, %s1372_s26 }
  0x88   : > { %p1374_p4 = pnand %p1373_p1, %p1544_p7 }
  0x89   : > { %p1379_p11 = por %p1378_p10, %p1377_p9 }
  0x8a   : > { %p1375_p8 = pneg %p1374_p4 }
  0x8b   : > { %492 = vadd.xlane.f32.xlu1 %v491_v27  ;;  %524 = vadd.xlane.f32.xlu2 %v523_v28 }
  0x8c   : > { %459 = vadd.xlane.f32.xlu0 %v458_v29  ;;  %p1380_p2 = pnand %p1379_p11, %p1375_p8 }
  0x93   : > { %462 = vadd.xlane.f32.xlu1 %v461_v36  ;;  %495 = vadd.xlane.f32.xlu2 %v494_v37 }
  0x94   : > { %527 = vadd.xlane.f32.xlu0 %v526_v38 }
  0x9b   : > { %465 = vadd.xlane.f32.xlu1 %v464_v45  ;;  %498 = vadd.xlane.f32.xlu2 %v497_v46 }
  0x9c   : > { %530 = vadd.xlane.f32.xlu0 %v529_v47  ;;  %v587_v47 = vlaneseq }
  0xa3   : > { %468 = vadd.xlane.f32.xlu1 %v467_v54  ;;  %501 = vadd.xlane.f32.xlu2 %v500_v55  ;;  %v1790_v55 = vand.u32 127, %v587_v47 }
  0xa4   : > { %533 = vadd.xlane.f32.xlu0 %v532_v56 }
  0xab   : > { %471 = vadd.xlane.f32.xlu1 %v470_v63  ;;  %504 = vadd.xlane.f32.xlu2 %v503_v0 }
  0xac   : > { %536 = vadd.xlane.f32.xlu0 %v535_v4 }
  0xb3   : > { %542 = vadd.xlane.f32.xlu1 %v541_v10  ;;  %545 = vadd.xlane.f32.xlu2 %v544_v12 }
  0xb4   : > { %539 = vadd.xlane.f32.xlu0 %v538_v13 }
  0xee   : > { %v484_v14 = vpop.xlane.xlu1 %483  ;;  %v457_v15 = vpop.xlane.xlu2 %456 }
  0xef   : > { %v451_v16 = vpop.xlane.xlu0 %450 }
  0xf0   : > { %v506_v35 = vadd.f32 %v484_v14, %v451_v16 }
  0xf6   : > { %v487_v17 = vpop.xlane.xlu1 %486  ;;  %v490_v18 = vpop.xlane.xlu2 %489 }
  0xf7   : > { %v454_v19 = vpop.xlane.xlu0 %453  ;;  %v508_v36 = vadd.f32 %v490_v18, %v457_v15 }
  0xf8   : > { %v507_v34 = vadd.f32 %v487_v17, %v454_v19 }
  0xfe   : > { %v493_v20 = vpop.xlane.xlu1 %492  ;;  %v525_v22 = vpop.xlane.xlu2 %524 }
  0xff   : > { %v460_v24 = vpop.xlane.xlu0 %459  ;;  %v547_v40 = vadd.f32 %v525_v22, %v506_v35 }
 0x100   : > { %v509_v37 = vadd.f32 %v493_v20, %v460_v24 }
 0x101   : > { %v563_v51 = vmul.f32 0.2, %v547_v40  ;;  %vm555_vm2 = vcmp.ge.f32.partialorder %v547_v40, 0.0 }
 0x103   : > { %v571_v58 = vsel %vm555_vm2, %v547_v40, %v563_v51 }
 0x104   : > { %v589_v3 = vperm.slane %v571_v58, %v1790_v55 }
 0x106   : > { %v463_v25 = vpop.xlane.xlu1 %462  ;;  %v496_v21 = vpop.xlane.xlu2 %495 }
 0x107   : > { %v528_v26 = vpop.xlane.xlu0 %527  ;;  %v510_v42 = vadd.f32 %v496_v21, %v463_v25 }
 0x108   : > { %v548_v38 = vadd.f32 %v528_v26, %v507_v34  ;;  %v1441_v34 = vmov 0  }
 0x109   : > { %1182 = vset.pattern.permute.xlu0 %v1441_v34  ;;  %1181 = vset.pattern.permute.xlu2 %v1441_v34 }
 0x10a   : > { %v564_v49 = vmul.f32 0.2, %v548_v38  ;;  %vm556_vm1 = vcmp.ge.f32.partialorder %v548_v38, 0.0  ;;  %1180 = vset.pattern.permute.xlu1 %v1441_v34 }
 0x10c   : > { %v572_v56 = vsel %vm556_vm1, %v548_v38, %v564_v49  ;;  %vm612_vm1 = vcmask 31744  }
 0x10d   : > { %v590_v6 = vperm.slane %v572_v56, %v1790_v55 }
 0x10e   : > { %v466_v27 = vpop.xlane.xlu1 %465  ;;  %v499_v28 = vpop.xlane.xlu2 %498 }
 0x10f   : > { %v531_v29 = vpop.xlane.xlu0 %530  ;;  %v511_v61 = vadd.f32 %v499_v28, %v466_v27  ;;  %v598_v18 = vsel %vm597_vm6, %v590_v6, %v589_v3 }
 0x110   : > { %v549_v41 = vadd.f32 %v531_v29, %v508_v36 }
 0x112   : > { %v565_v52 = vmul.f32 0.2, %v549_v41  ;;  %vm557_vm3 = vcmp.ge.f32.partialorder %v549_v41, 0.0 }
 0x114   : > { %v573_v59 = vsel %vm557_vm3, %v549_v41, %v565_v52  ;;  %vm919_vm3 = vcmask 253952  }
 0x115   : > { %v591_v1 = vperm.slane %v573_v59, %v1790_v55 }
 0x116   : > { %v469_v31 = vpop.xlane.xlu1 %468  ;;  %v502_v32 = vpop.xlane.xlu2 %501 }
 0x117   : > { %v534_v33 = vpop.xlane.xlu0 %533  ;;  %v512_v60 = vadd.f32 %v502_v32, %v469_v31  ;;  %v600_v20 = vsel %vm599_vm7, %v591_v1, %v598_v18 }
 0x118   : > { %v550_v43 = vadd.f32 %v534_v33, %v509_v37 }
 0x11a   : > { %v566_v53 = vmul.f32 0.2, %v550_v43  ;;  %vm558_vm4 = vcmp.ge.f32.partialorder %v550_v43, 0.0 }
 0x11c   : > { %v574_v62 = vsel %vm558_vm4, %v550_v43, %v566_v53 }
 0x11d   : > { %v592_v13 = vperm.slane %v574_v62, %v1790_v55 }
 0x11e   : > { %v472_v44 = vpop.xlane.xlu1 %471  ;;  %v505_v45 = vpop.xlane.xlu2 %504 }
 0x11f   : > { %v537_v46 = vpop.xlane.xlu0 %536  ;;  %v513_v63 = vadd.f32 %v505_v45, %v472_v44  ;;  %v602_v26 = vsel %vm601_vm8, %v592_v13, %v600_v20 }
 0x120   : > { %v551_v50 = vadd.f32 %v537_v46, %v510_v42 }
 0x122   : > { %v567_v54 = vmul.f32 0.2, %v551_v50  ;;  %vm559_vm5 = vcmp.ge.f32.partialorder %v551_v50, 0.0 }
 0x124   : > { %v575_v0 = vsel %vm559_vm5, %v551_v50, %v567_v54 }
 0x125   : > { %v593_v14 = vperm.slane %v575_v0, %v1790_v55 }
 0x126   : > { %v543_v4 = vpop.xlane.xlu1 %542  ;;  %v546_v8 = vpop.xlane.xlu2 %545 }
 0x127   : > { %v553_v7 = vadd.f32 %v543_v4, %v512_v60  ;;  %v540_v9 = vpop.xlane.xlu0 %539  ;;  %v554_v10 = vadd.f32 %v546_v8, %v513_v63  ;;  %v604_v27 = vsel %vm603_vm12, %v593_v14, %v602_v26 }
 0x128   : > { %v552_v12 = vadd.f32 %v540_v9, %v511_v61 }
 0x129   : > { %vm561_vm9 = vcmp.ge.f32.partialorder %v553_v7, 0.0  ;;  %v569_v15 = vmul.f32 0.2, %v553_v7  ;;  %vm562_vm10 = vcmp.ge.f32.partialorder %v554_v10, 0.0  ;;  %v570_v16 = vmul.f32 0.2, %v554_v10 }
 0x12a   : > { %vm560_vm11 = vcmp.ge.f32.partialorder %v552_v12, 0.0  ;;  %v568_v17 = vmul.f32 0.2, %v552_v12 }
 0x12b   : > { %v577_v19 = vsel %vm561_vm9, %v553_v7, %v569_v15  ;;  %v578_v24 = vsel %vm562_vm10, %v554_v10, %v570_v16 }
 0x12c   : > { %v595_v22 = vperm.slane %v577_v19, %v1790_v55  ;;  %v576_v25 = vsel %vm560_vm11, %v552_v12, %v568_v17  ;;  %v596_v28 = vperm.slane %v578_v24, %v1790_v55 }
 0x12d   : > { %v594_v21 = vperm.slane %v576_v25, %v1790_v55 }
 0x12f   : > { %v606_v29 = vsel %vm605_vm13, %v594_v21, %v604_v27 }
 0x130   : > { %v608_v31 = vsel %vm607_vm14, %v595_v22, %v606_v29 }
 0x131   : > { %v610_v32 = vsel %vm609_vm15, %v596_v28, %v608_v31 }
 0x132   : > { %v613_v33 = vsel %vm612_vm1, %v610_v32, -inf }
 0x133   : > { %614 = vmax.xlane.f32.xlu0 %v613_v33 }
 0x1a6   : > { %v615_v35 = vpop.xlane.xlu0 %614 }
 0x1a7   : > { %v619_v36 = vperm.slane %v615_v35, 2  ;;  %v618_v37 = vperm.slane %v615_v35, 1  ;;  %v617_v38 = vperm.slane %v615_v35, 0  ;;  %v620_v43 = vperm.slane %v615_v35, 3 }
 0x1a8   : > { %v621_v44 = vperm.slane %v615_v35, 4  ;;  %v622_v52 = vperm.slane %v615_v35, 5  ;;  %v623_v60 = vperm.slane %v615_v35, 6  ;;  %v624_v4 = vperm.slane %v615_v35, 7 }
 0x1a9   : > { %v635_v40 = vsub.f32 %v573_v59, %v619_v36  ;;  %v634_v41 = vsub.f32 %v572_v56, %v618_v37  ;;  %v633_v42 = vsub.f32 %v571_v58, %v617_v38  ;;  %v636_v49 = vsub.f32 %v574_v62, %v620_v43 }
 0x1aa   : > { %v637_v50 = vsub.f32 %v575_v0, %v621_v44  ;;  %v638_v56 = vsub.f32 %v576_v25, %v622_v52  ;;  %v639_v58 = vsub.f32 %v577_v19, %v623_v60  ;;  %v640_v0 = vsub.f32 %v578_v24, %v624_v4 }
 0x1ab   : > { %v645_v45 = vmul.f32 1.442695, %v635_v40  ;;  %v643_v46 = vmul.f32 1.442695, %v634_v41  ;;  %v641_v47 = vmul.f32 1.442695, %v633_v42 }
 0x1ac   : > { %v647_v51 = vmul.f32 1.442695, %v636_v49  ;;  %v649_v54 = vmul.f32 1.442695, %v637_v50  ;;  %v651_v63 = vmul.f32 1.442695, %v638_v56 }
 0x1ad   : > { %1186 = vpow2.f32 %v645_v45  ;;  %v653_v6 = vmul.f32 1.442695, %v639_v58  ;;  %v655_v8 = vmul.f32 1.442695, %v640_v0 }
 0x1ae   : > { %1188 = vpow2.f32 %v643_v46 }
 0x1af   : > { %1190 = vpow2.f32 %v641_v47 }
 0x1b0   : > { %1192 = vpow2.f32 %v647_v51 }
 0x1b1   : > { %1194 = vpow2.f32 %v649_v54 }
 0x1b2   : > { %1196 = vpow2.f32 %v651_v63 }
 0x1b3   : > { %v1187_v53 = vpop.eup %1186  ;;  %1198 = vpow2.f32 %v653_v6 }
 0x1b4   : > { %v1189_v61 = vpop.eup %1188  ;;  %672 = vperm.xlu0 %1182, %v1187_v53   ;;  %1200 = vpow2.f32 %v655_v8 }
 0x1b5   : > { %v1191_v59 = vpop.eup %1190  ;;  %669 = vperm.xlu2 %1181, %v1189_v61  }
 0x1b6   : > { %666 = vperm.xlu1 %1180, %v1191_v59   ;;  %v1193_v62 = vpop.eup %1192 }
 0x1b7   : > { %v1195_v7 = vpop.eup %1194 }
 0x1b8   : > { %v1197_v9 = vpop.eup %1196 }
 0x1b9   : > { %v1199_v3 = vpop.eup %1198 }
 0x1ba   : > { %v1201_v1 = vpop.eup %1200 }
 0x1bd   : > { %675 = vperm.xlu2 %1181, %v1193_v62  }
 0x1be   : > { %678 = vperm.xlu1 %1180, %v1195_v7  }
 0x1c5   : > { %681 = vperm.xlu2 %1181, %v1197_v9  }
 0x1c6   : > { %684 = vperm.xlu1 %1180, %v1199_v3  }
 0x1cd   : > { %687 = vperm.xlu2 %1181, %v1201_v1  }
 0x20f   : > { %v670_v10 = vpop.permute.xlu2 %669 }
 0x210   : > { %v690_v17 = vperm.slane %v670_v10, %v1790_v55  ;;  %v435_v10 = vld [vmem:[#allocation10 + $0x18] sm:$0xff] }
 0x211   : > { %899 = vmatpush.msra.mxu0 %v435_v10 }
 0x217   : > { %v676_v12 = vpop.permute.xlu2 %675 }
 0x218   : > { %v692_v25 = vperm.slane %v676_v12, %v1790_v55  ;;  %v434_v12 = vld [vmem:[#allocation10 + $0x10] sm:$0xff] }
 0x219   : > { %900 = vmatpush.msra.mxu0 %v434_v12 }
 0x21f   : > { %v682_v16 = vpop.permute.xlu2 %681 }
 0x220   : > { %v694_v28 = vperm.slane %v682_v16, %v1790_v55 }
 0x226   : > { %v673_v14 = vpop.permute.xlu0 %672 }
 0x227   : > { %v691_v18 = vperm.slane %v673_v14, %v1790_v55  ;;  %v688_v26 = vpop.permute.xlu2 %687  ;;  %v433_v14 = vld [vmem:[#allocation10 + $0x8] sm:$0xff] }
 0x228   : > { %v667_v13 = vpop.permute.xlu1 %666  ;;  %v696_v32 = vperm.slane %v688_v26, %v1790_v55  ;;  %901 = vmatpush.msra.mxu0 %v433_v14 }
 0x229   : > { %v689_v15 = vperm.slane %v667_v13, %v1790_v55 }
 0x22b   : > { %v697_v19 = vsel %vm597_vm6, %v690_v17, %v689_v15 }
 0x22c   : > { %v698_v22 = vsel %vm599_vm7, %v691_v18, %v697_v19  ;;  %v432_v18 = vld [vmem:[#allocation10] sm:$0xff] }
 0x22d   : > { %v699_v21 = vsel %vm601_vm8, %v692_v25, %v698_v22  ;;  %902 = vmatpush.msra.mxu0 %v432_v18 }
 0x230   : > { %v679_v20 = vpop.permute.xlu1 %678 }
 0x231   : > { %v693_v24 = vperm.slane %v679_v20, %v1790_v55 }
 0x233   : > { %v700_v27 = vsel %vm603_vm12, %v693_v24, %v699_v21 }
 0x234   : > { %v701_v33 = vsel %vm605_vm13, %v694_v28, %v700_v27 }
 0x238   : > { %v685_v29 = vpop.permute.xlu1 %684 }
 0x239   : > { %v695_v31 = vperm.slane %v685_v29, %v1790_v55 }
 0x23b   : > { %v702_v34 = vsel %vm607_vm14, %v695_v31, %v701_v33 }
 0x23c   : > { %v703_v35 = vsel %vm609_vm15, %v696_v32, %v702_v34 }
 0x23d   : > { %v705_v36 = vsel %vm612_vm1, %v703_v35, 0.0 }
 0x23e   : > { %706 = vadd.xlane.f32.xlu1 %v705_v36 }
 0x2b1   : > { %v707_v37 = vpop.xlane.xlu1 %706 }
 0x2b2   : > { %1202 = vrcp.f32 %v707_v37 }
 0x2b8   : > { %v1203_v38 = vpop.eup %1202 }
 0x2b9   : > { %v712_v40 = vperm.slane %v1203_v38, 2  ;;  %v711_v41 = vperm.slane %v1203_v38, 1  ;;  %v713_v44 = vperm.slane %v1203_v38, 3  ;;  %v710_v55 = vperm.slane %v1203_v38, 0 }
 0x2ba   : > { %v715_v47 = vperm.slane %v1203_v38, 5  ;;  %v714_v49 = vperm.slane %v1203_v38, 4  ;;  %v717_v52 = vperm.slane %v1203_v38, 7  ;;  %v716_v54 = vperm.slane %v1203_v38, 6 }
 0x2bb   : > { %v728_v42 = vmul.f32 %v1187_v53, %v712_v40  ;;  %v727_v43 = vmul.f32 %v1189_v61, %v711_v41  ;;  %v729_v45 = vmul.f32 %v1193_v62, %v713_v44  ;;  %v726_v46 = vmul.f32 %v1191_v59, %v710_v55 }
 0x2bc   : > { %v731_v50 = vmul.f32 %v1197_v9, %v715_v47  ;;  %v730_v51 = vmul.f32 %v1195_v7, %v714_v49  ;;  %v733_v60 = vmul.f32 %v1201_v1, %v717_v52  ;;  %v732_v56 = vmul.f32 %v1199_v3, %v716_v54 }
 0x2bd   : > { %746 = vperm.xlu2 %1181, %v728_v42   ;;  %741 = vperm.xlu0 %1182, %v727_v43   ;;  %v431_v43 = vld [vmem:[%s1669_s30] sm:$0xff] }
 0x2be   : > { %v845_v18 = vrot.slane %v431_v43, 7 }
 0x2c5   : > { %751 = vperm.xlu2 %1181, %v729_v45   ;;  %736 = vperm.xlu0 %1182, %v726_v46   ;;  %v839_v46 = vrot.slane %v431_v43, 1 }
 0x2cd   : > { %761 = vperm.xlu2 %1181, %v731_v50   ;;  %756 = vperm.xlu0 %1182, %v730_v51  }
 0x2d5   : > { %771 = vperm.xlu2 %1181, %v733_v60   ;;  %766 = vperm.xlu0 %1182, %v732_v56   ;;  %v840_v60 = vrot.slane %v431_v43, 2 }
 0x317   : > { %v747_v53 = vpop.permute.xlu2 %746 }
 0x318   : > { %v776_v63 = vmul.f32 %v747_v53, %v1686_v2 }
 0x31a   : > { %v796_v62 = vsel %vm448_vm0, %v776_v63, 0.0 }
 0x31b   : > { %v797_v9 = vrot.slane %v796_v62, 4 }
 0x31d   : > { %v798_v16 = vadd.f32 %v797_v9, %v796_v62  ;;  %v841_v62 = vrot.slane %v431_v43, 3 }
 0x31f   : > { %v752_v61 = vpop.permute.xlu2 %751 }
 0x320   : > { %v777_v6 = vmul.f32 %v752_v61, %v1724_v23 }
 0x322   : > { %v803_v3 = vsel %vm448_vm0, %v777_v6, 0.0 }
 0x323   : > { %v804_v23 = vrot.slane %v803_v3, 4 }
 0x325   : > { %v805_v24 = vadd.f32 %v804_v23, %v803_v3 }
 0x327   : > { %v762_v58 = vpop.permute.xlu2 %761  ;;  %v806_v29 = vrot.slane %v805_v24, 2 }
 0x328   : > { %v779_v1 = vmul.f32 %v762_v58, %v1746_v39 }
 0x329   : > { %v807_v40 = vadd.f32 %v806_v29, %v805_v24 }
 0x32a   : > { %v817_v17 = vsel %vm448_vm0, %v779_v1, 0.0 }
 0x32b   : > { %v818_v25 = vrot.slane %v817_v17, 4  ;;  %v808_v51 = vrot.slane %v807_v40, 1 }
 0x32d   : > { %v819_v31 = vadd.f32 %v818_v25, %v817_v17 }
 0x32f   : > { %v742_v59 = vpop.permute.xlu0 %741  ;;  %v772_v8 = vpop.permute.xlu2 %771  ;;  %v820_v41 = vrot.slane %v819_v31, 2 }
 0x330   : > { %v775_v4 = vmul.f32 %v742_v59, %v1705_v11  ;;  %v781_v2 = vmul.f32 %v772_v8, %v1770_v57  ;;  %v799_v57 = vrot.slane %v798_v16, 2  ;;  %v842_v59 = vrot.slane %v431_v43, 4 }
 0x332   : > { %v789_v7 = vsel %vm448_vm0, %v775_v4, 0.0  ;;  %v831_v39 = vsel %vm448_vm0, %v781_v2, 0.0  ;;  %v800_v33 = vadd.f32 %v799_v57, %v798_v16 }
 0x333   : > { %v790_v0 = vrot.slane %v789_v7, 4  ;;  %v832_v26 = vrot.slane %v831_v39, 4 }
 0x334   : > { %v801_v44 = vrot.slane %v800_v33, 1 }
 0x335   : > { %v791_v13 = vadd.f32 %v790_v0, %v789_v7  ;;  %v833_v35 = vadd.f32 %v832_v26, %v831_v39  ;;  %v809_v7 = vadd.f32 %v808_v51, %v807_v40  ;;  %v844_v39 = vrot.slane %v431_v43, 6 }
 0x336   : > { %v802_v56 = vadd.f32 %v801_v44, %v800_v33 }
 0x337   : > { %v737_v11 = vpop.permute.xlu0 %736  ;;  %v792_v19 = vrot.slane %v791_v13, 2  ;;  %v834_v45 = vrot.slane %v833_v35, 2  ;;  %v857_v2 = vadd.f32 %v841_v62, %v809_v7 }
 0x338   : > { %v774_v15 = vmul.f32 %v737_v11, %v1695_v5  ;;  %v856_v9 = vadd.f32 %v840_v60, %v802_v56  ;;  %v843_v11 = vrot.slane %v431_v43, 5 }
 0x339   : > { %v793_v5 = vadd.f32 %v792_v19, %v791_v13  ;;  %v835_v61 = vadd.f32 %v834_v45, %v833_v35  ;;  %v874_v24 = vrot.slane %v857_v2, 5 }
 0x33a   : > { %v782_v20 = vsel %vm448_vm0, %v774_v15, 0.0  ;;  %v872_v15 = vrot.slane %v856_v9, 6 }
 0x33b   : > { %v783_v22 = vrot.slane %v782_v20, 4  ;;  %v794_v36 = vrot.slane %v793_v5, 1  ;;  %v836_v10 = vrot.slane %v835_v61, 1 }
 0x33d   : > { %v784_v21 = vadd.f32 %v783_v22, %v782_v20  ;;  %v795_v47 = vadd.f32 %v794_v36, %v793_v5  ;;  %v837_v17 = vadd.f32 %v836_v10, %v835_v61 }
 0x33f   : > { %v785_v27 = vrot.slane %v784_v21, 2  ;;  %v757_v28 = vpop.permute.xlu0 %756  ;;  %v855_v58 = vadd.f32 %v839_v46, %v795_v47 }
 0x340   : > { %v778_v32 = vmul.f32 %v757_v28, %v1734_v30  ;;  %v821_v30 = vadd.f32 %v820_v41, %v819_v31 }
 0x341   : > { %v786_v34 = vadd.f32 %v785_v27, %v784_v21  ;;  %v870_v12 = vrot.slane %v855_v58, 7  ;;  %v861_v21 = vadd.f32 %v845_v18, %v837_v17 }
 0x342   : > { %v810_v37 = vsel %vm448_vm0, %v778_v32, 0.0  ;;  %v822_v0 = vrot.slane %v821_v30, 1 }
 0x343   : > { %v811_v38 = vrot.slane %v810_v37, 4  ;;  %v787_v42 = vrot.slane %v786_v34, 1  ;;  %v882_v32 = vrot.slane %v861_v21, 1 }
 0x344   : > { %v823_v14 = vadd.f32 %v822_v0, %v821_v30 }
 0x345   : > { %v812_v55 = vadd.f32 %v811_v38, %v810_v37  ;;  %v788_v52 = vadd.f32 %v787_v42, %v786_v34 }
 0x346   : > { %v859_v25 = vadd.f32 %v843_v11, %v823_v14 }
 0x347   : > { %v813_v49 = vrot.slane %v812_v55, 2  ;;  %v767_v50 = vpop.permute.xlu0 %766  ;;  %v854_v8 = vadd.f32 %v788_v52, %v431_v43 }
 0x348   : > { %v780_v54 = vmul.f32 %v767_v50, %v1758_v48  ;;  %v878_v28 = vrot.slane %v859_v25, 3 }
 0x349   : > { %v814_v53 = vadd.f32 %v813_v49, %v812_v55  ;;  %v871_v23 = vsel %vm597_vm6, %v870_v12, %v854_v8 }
 0x34a   : > { %v824_v63 = vsel %vm448_vm0, %v780_v54, 0.0  ;;  %v873_v22 = vsel %vm599_vm7, %v872_v15, %v871_v23  ;;  %vm884_vm0 = vcmask 261120  }
 0x34b   : > { %v815_v4 = vrot.slane %v814_v53, 1  ;;  %v825_v6 = vrot.slane %v824_v63, 4  ;;  %v875_v26 = vsel %vm601_vm8, %v874_v24, %v873_v22 }
 0x34d   : > { %v816_v3 = vadd.f32 %v815_v4, %v814_v53  ;;  %v826_v1 = vadd.f32 %v825_v6, %v824_v63 }
 0x34f   : > { %v858_v48 = vadd.f32 %v842_v59, %v816_v3  ;;  %v827_v13 = vrot.slane %v826_v1, 2 }
 0x351   : > { %v828_v16 = vadd.f32 %v827_v13, %v826_v1  ;;  %v876_v19 = vrot.slane %v858_v48, 4 }
 0x353   : > { %v829_v20 = vrot.slane %v828_v16, 1  ;;  %v877_v27 = vsel %vm603_vm12, %v876_v19, %v875_v26 }
 0x354   : > { %v879_v31 = vsel %vm605_vm13, %v878_v28, %v877_v27 }
 0x355   : > { %v830_v57 = vadd.f32 %v829_v20, %v828_v16 }
 0x357   : > { %v860_v5 = vadd.f32 %v844_v39, %v830_v57 }
 0x359   : > { %v880_v29 = vrot.slane %v860_v5, 2 }
 0x35b   : > { %v881_v33 = vsel %vm607_vm14, %v880_v29, %v879_v31 }
 0x35c   : > { %v883_v34 = vsel %vm609_vm15, %v882_v32, %v881_v33 }
 0x35d   : > { %1096 = vmatmul.msk.f32.vlgmr.msra.gmra.mxu0 %vm884_vm0, %v883_v34 }
 0x3da   : > { %v904_v35 = vpop.f32.mrf.mxu0 }
 0x3db   : > { %v908_v36 = vmul.f32 1.442695, %v904_v35  ;;  %vm907_vm2 = vcmp.gt.f32.partialorder %v904_v35, 0.0 }
 0x3dd   : > { %1204 = vpow2.f32 %v908_v36 }
 0x3e3   : > { %v1205_v37 = vpop.eup %1204 }
 0x3e4   : > { %v1097_v38 = vadd.f32 -1.0, %v1205_v37 }
 0x3e6   : > { %v911_v40 = vsel %vm907_vm2, %v904_v35, %v1097_v38 }
 0x3e7   : > { %v912_v41 = vsel %vm884_vm0, %v911_v40, 0.0 }
 0x3e8   : > { %v913_v42 = vrot.slane %v912_v41, 4 }
 0x3ea   : > { %v914_v43 = vadd.f32 %v913_v42, %v912_v41 }
 0x3ec   : > { %v915_v44 = vrot.slane %v914_v43, 2 }
 0x3ee   : > { %v916_v55 = vadd.f32 %v915_v44, %v914_v43 }
 0x3f0   : > { %v917_v45 = vrot.slane %v916_v55, 1 }
 0x3f2   : > { %v918_v46 = vadd.f32 %v917_v45, %v916_v55 }
 0x3f4   : > { %920 = vst.msk [vmem:[%s406_s14] sm:$0x1] %vm919_vm3, %v918_v46 }
 0x3f5   : > { %1383 = shalt.err (!%p1380_p2)
}
 0x3f6   : > { %1115 = dma.vmem_to_hbm [thread:$0]  (%p1544_p7), %s933_s12, 16, %s935_s9, %s922_s0  }
 0x3f7 PF: > { %s946_s7 = sand.u32 1, %s1422_s21   ;;  %p1911_p12 = scmp.ge.s32.totalorder %s1434_s24, 2 }
 0x3f8   : > { %s947_s30 = scalar_lea.sflag [#allocation4], %s946_s7 }
 0x3f9   : > { %p1135_p13 = pnand %p1911_p12, %p1512_p6 }
 0x3fb   : > { %p1136_p0 = pneg %p1135_p13 }
 0x3fd   : > { %1417 = dma.done.wait (%p1136_p0), %s947_s30, 16  }
 0x3fe   : > { %1419 = vsyncadd (%p1136_p0), %s947_s30, 4294967280  ;;  %s1912_s24 = sld [smem:[#allocation19_spill]]  ;;  %s1915_s21 = smov %s1426_s22 }
 0x3ff   : > { %s1913_s11 = sld [smem:[#allocation17_spill]] }
 0x400   : > { %s1914_s23 = sld [smem:[#allocation20_spill]] }
 0x404   : > { %p25_p3 = scmp.ge.s32.totalorder %s1912_s24, 4  }
 0x405   : > { %s1916_s22 = smov %s1913_s11 }
 0x406   :  { %27 = sbr.rel (!%p25_p3) target bundleno = 13 (0xd), region = 130 }
 0x40b   :  { %952 = vsyncpa [#allocation3], 1 }
 0x40c   :  { %954 = vsyncpa [#allocation3 + $0x1], 1 }
 0x40d   :  { %955 = vsyncpa [#allocation6], 1 }
 0x40e   :  { %957 = vsyncpa [#allocation6 + $0x1], 1 }
 0x40f   :  { %958 = vsyncpa [#allocation9], 1 }
 0x410   :  { %960 = vsyncpa [#allocation9 + $0x1], 1 }
 0x411   :  { %961 = vsyncpa [#allocation4], 1 }
 0x412   :  { %963 = vsyncpa [#allocation4 + $0x1], 1 }

</bundles_post_ra>
